<compile_context>
chip_gen: v6e
topology: v6e:2x2x1
jax: 0.10.0
libtpu: 0.0.40
codegen_flags: <defaults>
</compile_context>

<pallas_src>
import functools

import jax
import jax.numpy as jnp
from jax import lax
from jax.experimental import pallas as pl
from jax.experimental.pallas import tpu as pltpu

_LOG2E = 1.4426950408889634
_NEG_BIG = -1.0e30  # large finite "-inf": avoids inf-inf NaN paths in the update


def _flash_attn_kernel(q_ref, k_ref, v_ref, o_ref, m_sc, l_sc, acc_sc, *,
                       scale, kv_valid, kv_tile, mask_kv, mxu_dtype):
    """One (batch, q-block, kv-block) grid step of online-softmax attention."""
    kv = pl.program_id(2)

    @pl.when(kv == 0)
    def _init():
        m_sc[...] = jnp.full_like(m_sc, _NEG_BIG)
        l_sc[...] = jnp.zeros_like(l_sc)
        acc_sc[...] = jnp.zeros_like(acc_sc)

    # Fold scale*log2(e) into Q (cheap: tq*D), feed MXU bf16 with f32 accumulate.
    q = (q_ref[0].astype(jnp.float32) * (scale * _LOG2E)).astype(mxu_dtype)
    k = k_ref[0].astype(mxu_dtype)
    v = v_ref[0].astype(mxu_dtype)

    # Base-2-scaled scores: contract last dims directly (no K transpose).
    s = lax.dot_general(
        q, k, (((1,), (1,)), ((), ())), preferred_element_type=jnp.float32
    )

    if mask_kv:  # static Python flag: emitted only when the kv axis was padded
        col = kv * kv_tile + lax.broadcasted_iota(jnp.int32, s.shape, 1)
        s = jnp.where(col < kv_valid, s, _NEG_BIG)

    # Online softmax in base 2 (exp2 skips exp's hidden log2e multiply).
    m_prev = m_sc[...]                                       # (tq, 1)
    m_new = jnp.maximum(m_prev, jnp.max(s, axis=-1, keepdims=True))
    alpha = jnp.exp2(m_prev - m_new)                         # (tq, 1)
    p = jnp.exp2(s - m_new)                                  # (tq, tk) f32

    l_sc[...] = alpha * l_sc[...] + jnp.sum(p, axis=-1, keepdims=True)
    acc_sc[...] = alpha * acc_sc[...] + jnp.dot(
        p.astype(mxu_dtype), v, preferred_element_type=jnp.float32
    )
    m_sc[...] = m_new

    @pl.when(kv == pl.num_programs(2) - 1)
    def _finalize():
        # Runs once per q-block: exact divide, no approx reciprocal needed.
        o_ref[0] = (acc_sc[...] / l_sc[...]).astype(o_ref.dtype)


def _cdiv(a, b):
    return -(-a // b)


def _round_up(a, b):
    return _cdiv(a, b) * b


def attention(Q, K, V, input_dim, *, q_tile_target=256, kv_tile_target=512):
    """softmax(Q @ K^T / sqrt(input_dim), -1) @ V via a flash-style Pallas kernel."""
    B, Sq, D = Q.shape
    Bk, Skv, Dk = K.shape
    assert (B, D) == (Bk, Dk) and K.shape == V.shape

    scale = 1.0 / (float(input_dim) ** 0.5)

    # MXU is bf16-native on v5e/v6e/v7x; f32 operands are multi-pass emulation.
    mxu_dtype = jnp.bfloat16 if Q.dtype in (jnp.float32, jnp.bfloat16) else Q.dtype

    # Sublane granularity: 8 rows for 32-bit, 16 for 16-bit, 32 for 8-bit dtypes.
    itemsize = jnp.dtype(Q.dtype).itemsize
    gran = {4: 8, 2: 16, 1: 32}.get(itemsize, 8)

    tq = min(q_tile_target, _round_up(Sq, gran))
    tk = min(kv_tile_target, _round_up(Skv, gran))

    # v7x has 2 TensorCores: keep >= 2 parallel grid steps when possible.
    while B * _cdiv(Sq, tq) < 2 and tq > gran:
        tq = max(gran, tq // 2)

    # Pad to tile multiples; padded kv columns are masked inside the kernel.
    Sq_p = _round_up(Sq, tq)
    Skv_p = _round_up(Skv, tk)
    Qp = jnp.pad(Q, ((0, 0), (0, Sq_p - Sq), (0, 0))) if Sq_p != Sq else Q
    Kp = jnp.pad(K, ((0, 0), (0, Skv_p - Skv), (0, 0))) if Skv_p != Skv else K
    Vp = jnp.pad(V, ((0, 0), (0, Skv_p - Skv), (0, 0))) if Skv_p != Skv else V

    kernel = functools.partial(
        _flash_attn_kernel,
        scale=scale,
        kv_valid=Skv,
        kv_tile=tk,
        mask_kv=(Skv_p != Skv),
        mxu_dtype=mxu_dtype,
    )

    cost = pl.CostEstimate(
        flops=4 * B * Sq * Skv * D,             # QK^T + PV matmuls
        transcendentals=B * Sq * Skv,           # one exp per score
        bytes_accessed=(Q.size + K.size + V.size + B * Sq * D) * itemsize,
    )

    out = pl.pallas_call(
        kernel,
        out_shape=jax.ShapeDtypeStruct((B, Sq_p, D), Q.dtype),
        grid_spec=pltpu.PrefetchScalarGridSpec(
            num_scalar_prefetch=0,
            grid=(B, Sq_p // tq, Skv_p // tk),
            in_specs=[
                pl.BlockSpec((1, tq, D), lambda b, qi, ki: (b, qi, 0)),
                pl.BlockSpec((1, tk, D), lambda b, qi, ki: (b, ki, 0)),
                pl.BlockSpec((1, tk, D), lambda b, qi, ki: (b, ki, 0)),
            ],
            out_specs=pl.BlockSpec((1, tq, D), lambda b, qi, ki: (b, qi, 0)),
            scratch_shapes=[
                pltpu.VMEM((tq, 1), jnp.float32),   # running max  m
                pltpu.VMEM((tq, 1), jnp.float32),   # running sum  l
                pltpu.VMEM((tq, D), jnp.float32),   # output accumulator
            ],
        ),
        compiler_params=pltpu.CompilerParams(
            dimension_semantics=("parallel", "parallel", "arbitrary"),
            vmem_limit_bytes=48 * 1024 * 1024,      # fits v7x's 64 MiB/TC VMEM
        ),
        cost_estimate=cost,
    )(Qp, Kp, Vp)

    return out[:, :Sq, :] if Sq_p != Sq else out


def _reference(Q, K, V, input_dim):
    s = jnp.einsum("bqd,bkd->bqk", Q.astype(jnp.float32), K.astype(jnp.float32))
    s = s / (float(input_dim) ** 0.5)
    p = jax.nn.softmax(s, axis=-1)
    return jnp.einsum("bqk,bkd->bqd", p, V.astype(jnp.float32)).astype(Q.dtype)


if __name__ == "__main__":
    # Small shapes consistent with the module's forward: batch=2, seq=8, hidden=32.
    B, S, D = 2, 8, 32
    input_dim = D

    key = jax.random.PRNGKey(0)
    kq, kk, kv = jax.random.split(key, 3)
    Q = jax.random.normal(kq, (B, S, D), dtype=jnp.float32)
    K = jax.random.normal(kk, (B, S, D), dtype=jnp.float32)
    V = jax.random.normal(kv, (B, S, D), dtype=jnp.float32)

    out = jax.block_until_ready(attention(Q, K, V, input_dim))

    ref = _reference(Q, K, V, input_dim)
    assert out.shape == (B, S, D)
    # bf16 MXU operands with f32 accumulation: ~1e-2 absolute error budget.
    assert jnp.allclose(out, ref, atol=3e-2, rtol=3e-2), "mismatch vs reference"

    print("KERNEL_OK")
</pallas_src>

<mosaic_0001>
module attributes {stable_mosaic.version = 11 : i64} {
  func.func @_flash_attn_kernel(%arg0: i32, %arg1: i32, %arg2: i32, %arg3: memref<1x8x32xf32, #tpu.memory_space<vmem>>, %arg4: memref<1x8x32xf32, #tpu.memory_space<vmem>>, %arg5: memref<1x8x32xf32, #tpu.memory_space<vmem>>, %arg6: memref<1x8x32xf32, #tpu.memory_space<vmem>>, %arg7: memref<8x1xf32, #tpu.memory_space<vmem>>, %arg8: memref<8x1xf32, #tpu.memory_space<vmem>>, %arg9: memref<8x32xf32, #tpu.memory_space<vmem>>) attributes {dimension_semantics = [#tpu.dimension_semantics<parallel>, #tpu.dimension_semantics<parallel>, #tpu.dimension_semantics<arbitrary>], iteration_bounds = array<i64: 2, 1, 1>, scalar_prefetch = 0 : i64, scratch_operands = 3 : i64, tpu.core_type = #tpu.core_type<tc>, window_params = [{transform_indices = @transform_0, window_bounds = array<i64: 1, 8, 32>}, {transform_indices = @transform_1, window_bounds = array<i64: 1, 8, 32>}, {transform_indices = @transform_2, window_bounds = array<i64: 1, 8, 32>}, {transform_indices = @transform_3, window_bounds = array<i64: 1, 8, 32>}]} {
    %c0_i32 = arith.constant 0 : i32
    %0 = arith.cmpi eq, %arg2, %c0_i32 : i32
    %1 = arith.extui %0 : i1 to i32
    %c0_i32_0 = arith.constant 0 : i32
    %2 = arith.cmpi ne, %1, %c0_i32_0 : i32
    scf.if %2 {
      %cst_27 = arith.constant -1.000000e+30 : f32
      %41 = vector.broadcast %cst_27 : f32 to vector<8x1xf32>
      %c0_28 = arith.constant 0 : index
      %c0_29 = arith.constant 0 : index
      %42 = vector.load %arg7[%c0_28, %c0_29] : memref<8x1xf32, #tpu.memory_space<vmem>>, vector<8x1xf32>
      tpu.vector_store %arg7[%c0_28, %c0_29], %41 {strides = array<i32>} : memref<8x1xf32, #tpu.memory_space<vmem>>, vector<8x1xf32>,
      %cst_30 = arith.constant 0.000000e+00 : f32
      %43 = vector.broadcast %cst_30 : f32 to vector<8x1xf32>
      %c0_31 = arith.constant 0 : index
      %c0_32 = arith.constant 0 : index
      %44 = vector.load %arg8[%c0_31, %c0_32] : memref<8x1xf32, #tpu.memory_space<vmem>>, vector<8x1xf32>
      tpu.vector_store %arg8[%c0_31, %c0_32], %43 {strides = array<i32>} : memref<8x1xf32, #tpu.memory_space<vmem>>, vector<8x1xf32>,
      %cst_33 = arith.constant 0.000000e+00 : f32
      %45 = vector.broadcast %cst_33 : f32 to vector<8x32xf32>
      %c0_34 = arith.constant 0 : index
      %c0_35 = arith.constant 0 : index
      %46 = vector.load %arg9[%c0_34, %c0_35] : memref<8x32xf32, #tpu.memory_space<vmem>>, vector<8x32xf32>
      tpu.vector_store %arg9[%c0_34, %c0_35], %45 {strides = array<i32>} : memref<8x32xf32, #tpu.memory_space<vmem>>, vector<8x32xf32>,
    } else {
    }
    %c0 = arith.constant 0 : index
    %c0_1 = arith.constant 0 : index
    %c0_2 = arith.constant 0 : index
    %3 = vector.load %arg3[%c0, %c0_1, %c0_2] : memref<1x8x32xf32, #tpu.memory_space<vmem>>, vector<1x8x32xf32>
    %4 = vector.shape_cast %3 : vector<1x8x32xf32> to vector<8x32xf32>
    %cst = arith.constant 0.255034864 : f32
    %5 = vector.broadcast %cst : f32 to vector<8x32xf32>
    %6 = arith.mulf %4, %5 : vector<8x32xf32>
    %7 = arith.truncf %6 : vector<8x32xf32> to vector<8x32xbf16>
    %c0_3 = arith.constant 0 : index
    %c0_4 = arith.constant 0 : index
    %c0_5 = arith.constant 0 : index
    %8 = vector.load %arg4[%c0_3, %c0_4, %c0_5] : memref<1x8x32xf32, #tpu.memory_space<vmem>>, vector<1x8x32xf32>
    %9 = vector.shape_cast %8 : vector<1x8x32xf32> to vector<8x32xf32>
    %10 = arith.truncf %9 : vector<8x32xf32> to vector<8x32xbf16>
    %c0_6 = arith.constant 0 : index
    %c0_7 = arith.constant 0 : index
    %c0_8 = arith.constant 0 : index
    %11 = vector.load %arg5[%c0_6, %c0_7, %c0_8] : memref<1x8x32xf32, #tpu.memory_space<vmem>>, vector<1x8x32xf32>
    %12 = vector.shape_cast %11 : vector<1x8x32xf32> to vector<8x32xf32>
    %13 = arith.truncf %12 : vector<8x32xf32> to vector<8x32xbf16>
    %cst_9 = arith.constant dense<0.000000e+00> : vector<8x8xf32>
    %14 = tpu.matmul %7, %10, %cst_9 {dimension_numbers = #tpu.dot_dimension_numbers<[1], [1], [0], [0], [0, 0, 1, 0], [], []>} : vector<8x32xbf16>, vector<8x32xbf16>, vector<8x8xf32> -> vector<8x8xf32>
    %c0_10 = arith.constant 0 : index
    %c0_11 = arith.constant 0 : index
    %15 = vector.load %arg7[%c0_10, %c0_11] : memref<8x1xf32, #tpu.memory_space<vmem>>, vector<8x1xf32>
    %cst_12 = arith.constant dense<0xFF800000> : vector<8xf32>
    %16 = vector.multi_reduction <maximumf>, %14, %cst_12 [1] : vector<8x8xf32> to vector<8xf32>
    %17 = vector.shape_cast %16 : vector<8xf32> to vector<8x1xf32>
    %18 = arith.maximumf %15, %17 : vector<8x1xf32>
    %19 = arith.subf %15, %18 : vector<8x1xf32>
    %20 = math.exp2 %19 : vector<8x1xf32>
    %21 = vector.broadcast %18 : vector<8x1xf32> to vector<8x8xf32>
    %22 = arith.subf %14, %21 : vector<8x8xf32>
    %23 = math.exp2 %22 : vector<8x8xf32>
    %c0_13 = arith.constant 0 : index
    %c0_14 = arith.constant 0 : index
    %24 = vector.load %arg8[%c0_13, %c0_14] : memref<8x1xf32, #tpu.memory_space<vmem>>, vector<8x1xf32>
    %25 = arith.mulf %20, %24 : vector<8x1xf32>
    %cst_15 = arith.constant dense<0.000000e+00> : vector<8xf32>
    %26 = vector.multi_reduction <add>, %23, %cst_15 [1] : vector<8x8xf32> to vector<8xf32>
    %27 = vector.shape_cast %26 : vector<8xf32> to vector<8x1xf32>
    %28 = arith.addf %25, %27 : vector<8x1xf32>
    %c0_16 = arith.constant 0 : index
    %c0_17 = arith.constant 0 : index
    %29 = vector.load %arg8[%c0_16, %c0_17] : memref<8x1xf32, #tpu.memory_space<vmem>>, vector<8x1xf32>
    tpu.vector_store %arg8[%c0_16, %c0_17], %28 {strides = array<i32>} : memref<8x1xf32, #tpu.memory_space<vmem>>, vector<8x1xf32>,
    %c0_18 = arith.constant 0 : index
    %c0_19 = arith.constant 0 : index
    %30 = vector.load %arg9[%c0_18, %c0_19] : memref<8x32xf32, #tpu.memory_space<vmem>>, vector<8x32xf32>
    %31 = vector.broadcast %20 : vector<8x1xf32> to vector<8x32xf32>
    %32 = arith.mulf %31, %30 : vector<8x32xf32>
    %33 = arith.truncf %23 : vector<8x8xf32> to vector<8x8xbf16>
    %cst_20 = arith.constant dense<0.000000e+00> : vector<8x32xf32>
    %34 = tpu.matmul %33, %13, %cst_20 {dimension_numbers = #tpu.dot_dimension_numbers<[1], [0], [0], [1], [0, 0, 1, 1], [], []>} : vector<8x8xbf16>, vector<8x32xbf16>, vector<8x32xf32> -> vector<8x32xf32>
    %35 = arith.addf %32, %34 : vector<8x32xf32>
    %c0_21 = arith.constant 0 : index
    %c0_22 = arith.constant 0 : index
    %36 = vector.load %arg9[%c0_21, %c0_22] : memref<8x32xf32, #tpu.memory_space<vmem>>, vector<8x32xf32>
    tpu.vector_store %arg9[%c0_21, %c0_22], %35 {strides = array<i32>} : memref<8x32xf32, #tpu.memory_space<vmem>>, vector<8x32xf32>,
    %c0_23 = arith.constant 0 : index
    %c0_24 = arith.constant 0 : index
    %37 = vector.load %arg7[%c0_23, %c0_24] : memref<8x1xf32, #tpu.memory_space<vmem>>, vector<8x1xf32>
    tpu.vector_store %arg7[%c0_23, %c0_24], %18 {strides = array<i32>} : memref<8x1xf32, #tpu.memory_space<vmem>>, vector<8x1xf32>,
    %c0_i32_25 = arith.constant 0 : i32
    %38 = arith.cmpi eq, %arg2, %c0_i32_25 : i32
    %39 = arith.extui %38 : i1 to i32
    %c0_i32_26 = arith.constant 0 : i32
    %40 = arith.cmpi ne, %39, %c0_i32_26 : i32
    scf.if %40 {
      %c0_27 = arith.constant 0 : index
      %c0_28 = arith.constant 0 : index
      %41 = vector.load %arg9[%c0_27, %c0_28] : memref<8x32xf32, #tpu.memory_space<vmem>>, vector<8x32xf32>
      %c0_29 = arith.constant 0 : index
      %c0_30 = arith.constant 0 : index
      %42 = vector.load %arg8[%c0_29, %c0_30] : memref<8x1xf32, #tpu.memory_space<vmem>>, vector<8x1xf32>
      %43 = vector.broadcast %42 : vector<8x1xf32> to vector<8x32xf32>
      %44 = arith.divf %41, %43 : vector<8x32xf32>
      %c0_31 = arith.constant 0 : index
      %c0_32 = arith.constant 0 : index
      %c0_33 = arith.constant 0 : index
      %45 = vector.load %arg6[%c0_31, %c0_32, %c0_33] : memref<1x8x32xf32, #tpu.memory_space<vmem>>, vector<1x8x32xf32>
      %46 = vector.shape_cast %45 : vector<1x8x32xf32> to vector<8x32xf32>
      %47 = vector.shape_cast %44 : vector<8x32xf32> to vector<1x8x32xf32>
      tpu.vector_store %arg6[%c0_31, %c0_32, %c0_33], %47 {strides = array<i32>} : memref<1x8x32xf32, #tpu.memory_space<vmem>>, vector<1x8x32xf32>,
    } else {
    }
    return
  }
  func.func @transform_0(%arg0: i32, %arg1: i32, %arg2: i32) -> (i32, i32, i32) {
    %c0_i32 = arith.constant 0 : i32
    %c0_i32_0 = arith.constant 0 : i32
    return %arg0, %arg1, %c0_i32 : i32, i32, i32
  }
  func.func @transform_1(%arg0: i32, %arg1: i32, %arg2: i32) -> (i32, i32, i32) {
    %c0_i32 = arith.constant 0 : i32
    %c0_i32_0 = arith.constant 0 : i32
    return %arg0, %arg2, %c0_i32 : i32, i32, i32
  }
  func.func @transform_2(%arg0: i32, %arg1: i32, %arg2: i32) -> (i32, i32, i32) {
    %c0_i32 = arith.constant 0 : i32
    %c0_i32_0 = arith.constant 0 : i32
    return %arg0, %arg2, %c0_i32 : i32, i32, i32
  }
  func.func @transform_3(%arg0: i32, %arg1: i32, %arg2: i32) -> (i32, i32, i32) {
    %c0_i32 = arith.constant 0 : i32
    %c0_i32_0 = arith.constant 0 : i32
    return %arg0, %arg1, %c0_i32 : i32, i32, i32
  }
}

</mosaic_0001>

<bundles_post_ra>
// kernel: tpu_custom_call.1
= control target key start
LH: loop header
LB: loop body
LE: loop exit
PB: predicated region body
PF: predicated region fallthrough
CT: control target
= control target key end

     0   :  { %s1117_s0 = inlined_call_operand.hbm [shape: f32[2,8,32], index: 0, kind: input, shape index: {}]   ;;  %s1118_s1 = inlined_call_operand.hbm [shape: f32[2,8,32], index: 1, kind: input, shape index: {}]   ;;  %s1119_s2 = inlined_call_operand.hbm [shape: f32[2,8,32], index: 2, kind: input, shape index: {}]   ;;  %s1120_s3 = inlined_call_operand.hbm [shape: f32[2,8,32], index: 3, kind: output, shape index: {}]  }
   0x1   :  { %1124 = sst [smem:[#allocation17_spill]] %s1118_s1 }
   0x2   :  { %8 = vsyncpa [#allocation6], 0 }
   0x3   :  { %10 = vsyncpa [#allocation6 + $0x1], 0 }
   0x4   :  { %11 = vsyncpa [#allocation9], 0 }
   0x5   :  { %13 = vsyncpa [#allocation9 + $0x1], 0 }
   0x6   :  { %14 = vsyncpa [#allocation7], 0 }
   0x7   :  { %16 = vsyncpa [#allocation7 + $0x1], 0  ;;  %s907_s12 = smov 0   ;;  %s909_s13 = smov 0  }
   0x8   :  { %s911_s14 = smov 0   ;;  %s913_s15 = smov 0  }
   0x9   :  { %s915_s16 = smov 0   ;;  %s917_s17 = smov 0  }
   0xa LB: > { %1125 = sst [smem:[#allocation15_spill]] %s873_s16  ;;  %s938_s18 = sadd.s32 4294967295, %s877_s17   ;;  %s877_s17 = sphi %s917_s17, %s22_s17   ;;  %s873_s16 = sphi %s915_s16, %s1137_s16   ;;  %s869_s15 = sphi %s913_s15, %s1136_s15   ;;  %s865_s14 = sphi %s911_s14, %s1140_s14   ;;  %s861_s13 = sphi %s909_s13, %s1139_s13   ;;  %s857_s12 = sphi %s907_s12, %s1138_s12  }
   0xb   : > { %s589_s19 = sadd.s32 4294967294, %s877_s17   ;;  %s41_s20 = sadd.s32 1, %s873_s16 }
   0xc   : > { %s50_s21 = sadd.s32 1, %s865_s14  ;;  %p43_p0 = scmp.ge.s32.totalorder %s41_s20, 2 }
   0xd   : > { %p57_p1 = scmp.ne.s32.totalorder %s865_s14, %s861_s13  ;;  %p58_p2 = scmp.eq.s32.totalorder %s877_s17, 0 }
   0xe   : > { %p63_p3 = scmp.ne.s32.totalorder %s861_s13, %s857_s12  ;;  %s1142_s20 = smov (%p43_p0, %s41_s20), 0 }
   0xf   : > { %1126 = sst [smem:[#allocation16_spill]] %s1142_s20  ;;  %p950_p4 = por %p58_p2, %p57_p1 }
  0x10   : > { %p64_p5 = scmp.eq.s32.totalorder %s938_s18, 0  ;;  %s45_s23 = ssub.s32 %s873_s16, %s1142_s20 }
  0x11   : > { %p145_p6 = scmp.eq.s32.totalorder %s938_s18, 1  ;;  %p48_p7 = scmp.eq.s32.totalorder %s45_s23, 0 }
  0x12   : > { %p958_p8 = por %p64_p5, %p63_p3  ;;  %p151_p10 = scmp.eq.s32.totalorder %s589_s19, 1 }
  0x13   : > { %p962_p9 = por %p145_p6, %p57_p1  ;;  %p647_p13 = scmp.lt.s32.totalorder %s877_s17, 2 }
  0x14   : > { %s967_s26 = scalar_select %p48_p7, %s865_s14, %s50_s21  }
  0x15   : > { %p969_p11 = por %p151_p10, %p63_p3  ;;  %s1121_s28 = sand.u32 1, %s865_s14  }
  0x16   : > { %s978_s29 = sshll.u32 %s1121_s28, 3  ;;  %s981_s30 = sshll.u32 %s873_s16, 7 }
  0x17   : > { %p985_p0 = pnand %p647_p13, %p950_p4  ;;  %s190_s5 = sand.u32 1, %s877_s17  }
  0x18   : > { %s1132_s1 = sld [smem:[#allocation17_spill]]  ;;  %s194_s9 = scalar_lea.vmem [#allocation8], %s978_s29 }
  0x19   : > { %s202_s10 = sshll.u32 %s194_s9, 4  ;;  %p598_p1 = scmp.ge.s32.totalorder %s877_s17, 1  ;;  %s203_s10 = int_to_ptr.vmem [resolvable:$true] %s202_s10 }
  0x1a   : > { %p226_p2 = scmp.lt.s32.totalorder %s877_s17, 3  ;;  %s997_s11 = scalar_lea.sflag [#allocation9], %s190_s5 }
  0x1b   : > { %p711_p3 = pneg %p985_p0  ;;  %s722_s19 = scalar_lea.vmem %s203_s10, 128 }
  0x1c   : > { %p723_p4 = scmp.ne.s32.totalorder %s203_s10, %s722_s19  ;;  %s879_s21 = smov [#allocation8]  }
  0x1d   : > { %s727_s22 = sshll.u32 %s879_s21, 4  ;;  %s728_s22 = int_to_ptr.vmem [resolvable:$false] %s727_s22 }
  0x1e   : > { %s200_s8 = scalar_lea.hbm %s1132_s1, %s981_s30  ;;  %p725_p5 = pnand %p723_p4, %p711_p3 }
  0x1f   : > { %s729_s23 = scalar_lea.vmem %s728_s22, 256  ;;  %p730_p7 = scmp.lt.s32.totalorder %s203_s10, %s728_s22 }
  0x20   : > { %p726_p6 = pneg %p725_p5  ;;  %p731_p10 = scmp.lt.s32.totalorder %s729_s23, %s722_s19 }
  0x22   : > { %p732_p13 = por %p731_p10, %p730_p7 }
  0x24   : > { %p733_p12 = pnand %p732_p13, %p726_p6 }
  0x26   : > { %736 = shalt.err (!%p733_p12)
}
  0x27   : > { %639 = dma.hbm_to_vmem [thread:$0]  (!%p985_p0), %s200_s8, 128, %s203_s10, %s997_s11  }
  0x28   : > { %p1011_p4 = pnand %p598_p1, %p226_p2  ;;  %s181_s9 = scalar_lea.hbm %s1117_s0, %s981_s30 }
  0x29   : > { %s175_s19 = scalar_lea.vmem [#allocation5], %s978_s29  ;;  %s219_s28 = scalar_lea.hbm %s1119_s2, %s981_s30 }
  0x2a   : > { %s183_s21 = sshll.u32 %s175_s19, 4  ;;  %s1134_s1 = sand.u32 1, %s865_s14   ;;  %s184_s21 = int_to_ptr.vmem [resolvable:$true] %s183_s21 }
  0x2b   : > { %s172_s20 = scalar_lea.sflag [#allocation6], %s1134_s1  ;;  %s750_s8 = scalar_lea.vmem %s184_s21, 128 }
  0x2c   : > { %p751_p12 = scmp.ne.s32.totalorder %s184_s21, %s750_s8  ;;  %s880_s10 = smov [#allocation5]  }
  0x2d   : > { %s755_s16 = sshll.u32 %s880_s10, 4  ;;  %s756_s16 = int_to_ptr.vmem [resolvable:$false] %s755_s16 }
  0x2e   : > { %p753_p1 = pnand %p751_p12, %p711_p3  ;;  %s757_s6 = scalar_lea.vmem %s756_s16, 256 }
  0x2f   : > { %p758_p5 = scmp.lt.s32.totalorder %s184_s21, %s756_s16  ;;  %p759_p6 = scmp.lt.s32.totalorder %s757_s6, %s750_s8 }
  0x30   : > { %p754_p2 = pneg %p753_p1 }
  0x31   : > { %p760_p7 = por %p759_p6, %p758_p5 }
  0x33   : > { %p761_p10 = pnand %p760_p7, %p754_p2 }
  0x35   : > { %764 = shalt.err (!%p761_p10)
}
  0x36   : > { %636 = dma.hbm_to_vmem [thread:$0]  (!%p985_p0), %s181_s9, 128, %s184_s21, %s172_s20  }
  0x37   : > { %s213_s1 = scalar_lea.vmem [#allocation10], %s978_s29  ;;  %s881_s22 = smov [#allocation10]  }
  0x38   : > { %s221_s7 = sshll.u32 %s213_s1, 4  ;;  %s783_s16 = sshll.u32 %s881_s22, 4  ;;  %s222_s7 = int_to_ptr.vmem [resolvable:$true] %s221_s7  ;;  %s784_s16 = int_to_ptr.vmem [resolvable:$false] %s783_s16 }
  0x39   : > { %s778_s19 = scalar_lea.vmem %s222_s7, 128  ;;  %s785_s23 = scalar_lea.vmem %s784_s16, 256 }
  0x3a   : > { %p779_p13 = scmp.ne.s32.totalorder %s222_s7, %s778_s19  ;;  %p786_p2 = scmp.lt.s32.totalorder %s222_s7, %s784_s16 }
  0x3b   : > { %p787_p5 = scmp.lt.s32.totalorder %s785_s23, %s778_s19 }
  0x3c   : > { %p781_p12 = pnand %p779_p13, %p711_p3 }
  0x3d   : > { %p788_p6 = por %p787_p5, %p786_p2 }
  0x3e   : > { %p782_p1 = pneg %p781_p12 }
  0x40   : > { %p789_p7 = pnand %p788_p6, %p782_p1 }
  0x42   : > { %792 = shalt.err (!%p789_p7)
}
  0x43   : > { %642 = dma.hbm_to_vmem [thread:$0]  (!%p985_p0), %s219_s28, 128, %s222_s7, %s997_s11  }
  0x44   : > { %230 = sbr.rel (%p1011_p4) target bundleno = 866 (0x362), region = 32  ;;  %s1046_s9 = sand.u32 (!%p1011_p4), 1, %s861_s13  }
  0x45   : > { %s1049_s21 = sshll.u32 (!%p1011_p4), %s1046_s9, 3  ;;  %s233_s4 = scalar_lea.sflag (!%p1011_p4), [#allocation6], %s1046_s9 }
  0x46   : > { %s236_s8 = scalar_lea.vmem (!%p1011_p4), [#allocation5], %s1049_s21 }
  0x49   : > { %844 = dma.done.wait (%p958_p8), %s233_s4, 128  }
  0x4a   : > { %846 = vsyncadd (%p958_p8), %s233_s4, 4294967168  ;;  %s241_s28 = sand.u32 1, %s938_s18   ;;  %s245_s11 = scalar_lea.vmem [#allocation8], %s1049_s21 }
  0x4b   : > { %s242_s30 = scalar_lea.sflag [#allocation9], %s241_s28 }
  0x4c   : > { %848 = dma.done.wait (%p958_p8), %s242_s30, 256  }
  0x4d   : > { %850 = vsyncadd (%p958_p8), %s242_s30, 4294967040  ;;  %vm295_vm0 = vcmask 261120   ;;  %v882_v0 = vmov 0.0   ;;  %vm883_vm1 = vmmov 0   ;;  %v300_v1 = vld [vmem:[%s245_s11] sm:$0xff]  ;;  %v297_v2 = vld [vmem:[%s236_s8] sm:$0xff] }
  0x4e   : > { %613 = vmatprep.subr.bf16.mxu0 %v882_v0  ;;  %296 = vst.msk [vmem:[#allocation4] sm:$0xff] %vm295_vm0, %v882_v0  ;;  %615 = vmatprep.mubr.msk.bf16.mxu0 %vm883_vm1, %v882_v0  ;;  %v301_v3 = vpack.c.bf16 %v300_v1, %v300_v1  ;;  %v298_v5 = vmul.f32 0.25503486, %v297_v2  ;;  %vm292_vm2 = vcmask 7168   ;;  %v884_v7 = vmov -1e+30  }
  0x4f   : > { %619 = vmatprep.subr.bf16.mxu1 %v882_v0  ;;  %621 = vmatprep.mubr.msk.bf16.mxu1 %vm883_vm1, %v882_v0  ;;  %293 = vst.msk [vmem:[#allocation2] sm:$0xff] %vm292_vm2, %v884_v7  ;;  %294 = vst.msk [vmem:[#allocation3] sm:$0xff] %vm292_vm2, %v882_v0  ;;  %vm352_vm3 = vcmask 64512   ;;  %v885_v13 = vmov 0   ;;  %s254_s18 = scalar_lea.vmem [#allocation10], %s1049_s21  ;;  %vm385_vm4 = vcmask 1043456  }
  0x50   : > { %v309_v4 = vsel %vm295_vm0, %v301_v3, 0  ;;  %v299_v6 = vpack.c.bf16 %v298_v5, %v298_v5  ;;  %701 = vset.pattern.permute.xlu0 %v885_v13  ;;  %702 = vset.pattern.permute.xlu1 %v885_v13  ;;  %v302_v17 = vld [vmem:[%s254_s18] sm:$0xff]  ;;  %s606_s24 = sshll.u32 %s869_s15, 7  ;;  %s286_s5 = scalar_lea.vmem [#allocation11], %s1049_s21 }
  0x51   : > { %614 = vmatpush3.bf16.xpose.msra.mxu0 %v309_v4  ;;  %v303_v19 = vpack.c.bf16 %v302_v17, %v302_v17  ;;  %s460_s10 = sshll.u32 %s286_s5, 4  ;;  %s458_s7 = scalar_lea.hbm %s1120_s3, %s606_s24  ;;  %s461_s10 = int_to_ptr.vmem [resolvable:$true] %s460_s10 }
  0x52   : > { %s446_s19 = scalar_lea.sflag [#allocation7], %s1046_s9  ;;  %s793_s22 = scalar_lea.vmem %s461_s10, 128 }
  0x53   : > { %v387_v20 = vsel %vm385_vm4, %v303_v19, 0  ;;  %p794_p8 = scmp.ne.s32.totalorder %s461_s10, %s793_s22  ;;  %s886_s16 = smov [#allocation11]  }
  0x54   : > { %620 = vmatpush3.bf16.msra.mxu1 %v387_v20  ;;  %s797_s15 = sshll.u32 %s886_s16, 4  ;;  %s798_s15 = int_to_ptr.vmem [resolvable:$false] %s797_s15 }
  0x55   : > { %v374_v37 = vld [vmem:[#allocation4] sm:$0xff]  ;;  %p795_p0 = pnand %p794_p8, %p962_p9  ;;  %s799_s23 = scalar_lea.vmem %s798_s15, 256 }
  0x56   : > { %v351_v14 = vld [vmem:[#allocation2] sm:$0xff]  ;;  %v366_v27 = vld [vmem:[#allocation3] sm:$0xff]  ;;  %p800_p4 = scmp.lt.s32.totalorder %s461_s10, %s798_s15  ;;  %p801_p10 = scmp.lt.s32.totalorder %s799_s23, %s793_s22 }
  0x57   : > { %p796_p3 = pneg %p795_p0 }
  0x58   : > { %616 = vmatmul.mubr.msk.bf16.vlgmr.msra.gmra.mxu0 %vm295_vm0, %v299_v6  ;;  %p802_p13 = por %p801_p10, %p800_p4 }
  0x5a   : > { %p803_p12 = pnand %p802_p13, %p796_p3 }
 0x118   : > { %v345_v8 = vpop.f32.mrf.mxu0 }
 0x119   : > { %v353_v9 = vsel %vm352_vm3, %v345_v8, -inf }
 0x11a   : > { %354 = vmax.xlane.f32.xlu0 %v353_v9  ;;  %v617_v10 = vpop.f32.mrf.mxu0 }
 0x11c   : > { %v348_v11 = vpop.f32.mrf.mxu0 }
 0x11e   : > { %v618_v12 = vpop.f32.mrf.mxu0 }
 0x1a3   : > { %v355_v15 = vpop.xlane.xlu0 %354 }
 0x1a4   : > { %v356_v16 = vmax.f32 %v351_v14, %v355_v15 }
 0x1a6   : > { %v357_v18 = vsub.f32 %v351_v14, %v356_v16  ;;  %431 = vst.msk [vmem:[#allocation2] sm:$0xff] %vm292_vm2, %v356_v16  ;;  %361 = vperm.xlu0 %701, %v356_v16  }
 0x221   : > { %v362_v21 = vpop.permute.xlu0 %361 }
 0x222   : > { %v364_v22 = vsub.f32 %v345_v8, %v362_v21 }
 0x224   : > { %703 = vpow2.f32 %v364_v22 }
 0x225   : > { %705 = vpow2.f32 %v357_v18 }
 0x231   : > { %v704_v23 = vpop.eup %703 }
 0x232   : > { %v368_v24 = vsel %vm352_vm3, %v704_v23, 0.0  ;;  %v381_v25 = vpack.c.bf16 %v704_v23, %v704_v23  ;;  %v706_v26 = vpop.eup %705 }
 0x233   : > { %369 = vadd.xlane.f32.xlu1 %v368_v24  ;;  %v367_v28 = vmul.f32 %v706_v26, %v366_v27 }
 0x234   : > { %622 = vmatmul.mubr.msk.bf16.vlgmr.msra.gmra.mxu1 %vm352_vm3, %v381_v25 }
 0x2bc   : > { %v370_v29 = vpop.xlane.xlu1 %369 }
 0x2bd   : > { %v371_v30 = vadd.f32 %v370_v29, %v367_v28 }
 0x2bf   : > { %373 = vst.msk [vmem:[#allocation3] sm:$0xff] %vm292_vm2, %v371_v30 }
 0x2c6   : > { %v436_v31 = vld [vmem:[#allocation3] sm:$0xff] }
 0x2c7   : > { %439 = vperm.xlu1 %702, %v436_v31  }
 0x2cb   : > { %377 = vperm.xlu1 %702, %v706_v26  }
 0x2f4   : > { %v423_v32 = vpop.f32.mrf.mxu1 }
 0x2f6   : > { %v623_v33 = vpop.f32.mrf.mxu1 }
 0x2f8   : > { %v426_v34 = vpop.f32.mrf.mxu1 }
 0x2fa   : > { %v624_v35 = vpop.f32.mrf.mxu1 }
 0x342   : > { %v440_v36 = vpop.permute.xlu1 %439 }
 0x343   : > { %707 = vrcp.f32 %v440_v36 }
 0x346   : > { %v378_v38 = vpop.permute.xlu1 %377 }
 0x347   : > { %v380_v39 = vmul.f32 %v378_v38, %v374_v37 }
 0x349   : > { %v429_v40 = vadd.f32 %v423_v32, %v380_v39 }
 0x34b   : > { %430 = vst.msk [vmem:[#allocation4] sm:$0xff] %vm295_vm0, %v429_v40 }
 0x350   : > { %v708_v41 = vpop.eup %707 }
 0x352   : > { %v435_v42 = vld [vmem:[#allocation4] sm:$0xff] }
 0x353   : > { %v443_v43 = vmul.f32 %v708_v41, %v435_v42 }
 0x355   : > { %444 = vst.msk [vmem:[%s286_s5] sm:$0xff] %vm295_vm0, %v443_v43 }
 0x356   : > { %806 = shalt.err (!%p803_p12)
}
 0x357   : > { %s807_s20 = scalar_lea.hbm %s458_s7, 128  ;;  %s811_s21 = scalar_lea.hbm %s1120_s3, 256 }
 0x358   : > { %p808_p1 = scmp.ne.s32.totalorder %s458_s7, %s807_s20  ;;  %p812_p6 = scmp.lt.s32.totalorder %s458_s7, %s1120_s3 }
 0x359   : > { %p813_p7 = scmp.lt.s32.totalorder %s811_s21, %s807_s20 }
 0x35a   : > { %p809_p2 = pnand %p808_p1, %p962_p9 }
 0x35b   : > { %p814_p8 = por %p813_p7, %p812_p6 }
 0x35c   : > { %p810_p5 = pneg %p809_p2 }
 0x35e   : > { %p815_p0 = pnand %p814_p8, %p810_p5 }
 0x360   : > { %818 = shalt.err (!%p815_p0)
}
 0x361   : > { %631 = dma.vmem_to_hbm [thread:$0]  (%p962_p9), %s461_s10, 128, %s458_s7, %s446_s19  }
 0x362 PF: > { %s472_s28 = sand.u32 1, %s857_s12   ;;  %p1135_p3 = scmp.ge.s32.totalorder %s877_s17, 2 }
 0x363   : > { %s473_s30 = scalar_lea.sflag [#allocation7], %s472_s28 }
 0x364   : > { %p644_p4 = pnand %p1135_p3, %p969_p11 }
 0x366   : > { %p645_p10 = pneg %p644_p4 }
 0x368   : > { %852 = dma.done.wait (%p645_p10), %s473_s30, 128  }
 0x369   : > { %854 = vsyncadd (%p645_p10), %s473_s30, 4294967168  ;;  %s22_s17 = sadd.s32 1, %s877_s17   ;;  %s1136_s15 = sld [smem:[#allocation15_spill]] }
 0x36a   : > { %p19_p13 = scmp.ge.s32.totalorder %s22_s17, 4   ;;  %s1137_s16 = sld [smem:[#allocation16_spill]] }
 0x36b   : > { %s1138_s12 = smov %s861_s13  ;;  %s1139_s13 = smov %s865_s14 }
 0x36c   : > { %s1140_s14 = smov %s967_s26  ;;  %21 = sbr.rel (!%p19_p13) target bundleno = 10 (0xa), region = 109 }
 0x371   :  { %478 = vsyncpa [#allocation6], 1 }
 0x372   :  { %480 = vsyncpa [#allocation6 + $0x1], 1 }
 0x373   :  { %481 = vsyncpa [#allocation9], 1 }
 0x374   :  { %483 = vsyncpa [#allocation9 + $0x1], 1 }
 0x375   :  { %484 = vsyncpa [#allocation7], 1 }
 0x376   :  { %486 = vsyncpa [#allocation7 + $0x1], 1 }

</bundles_post_ra>
